<compile_context>
chip_gen: v7x
topology: tpu7x:2x2x1
jax: 0.10.0
libtpu: 0.0.40
codegen_flags: <defaults>
</compile_context>

<pallas_src>
import functools

import jax
import jax.numpy as jnp
from jax.experimental import pallas as pl
from jax.experimental.pallas import tpu as pltpu


def gcm_kernel(x_ref, w1_ref, b1_ref, w2_ref, b2_ref, w3_ref, b3_ref, out_ref):
    f32, bf16 = jnp.float32, jnp.bfloat16

    # Fold sigmoid's affine constants into the tiny, VMEM-resident weights:
    #   sigmoid(W1 x + b1)   == 0.5 * (tanh(0.5*W1 x + 0.5*b1) + 1)
    #   W2 sigmoid(.) + b2   == (0.5*W2) tanh(.) + (b2 + 0.5*sum(W2, axis=1))
    # so the kernel only evaluates tanh (EUP).  The fold is O(n2*n1) per grid
    # step (a handful of vregs) — negligible next to the per-element savings.
    w1 = (w1_ref[...] * 0.5).astype(bf16)                           # (n2, n1)
    b1 = b1_ref[...] * 0.5                                          # (n2, 1)
    w2f = w2_ref[...]                                               # (n3, n2) f32
    w2 = (w2f * 0.5).astype(bf16)
    b2 = b2_ref[...] + 0.5 * jnp.sum(w2f, axis=1, keepdims=True)    # (n3, 1)
    w3 = w3_ref[...].astype(bf16)                                   # (1, n3)
    b3 = b3_ref[...]                                                # (1, 1)

    # x tile arrives untransposed as (blk, n1); contract on the shared feature
    # axis so the result is (n2, blk) with the batch on the 128-lane axis.
    x = x_ref[...].astype(bf16)                                     # (blk, n1)
    z1 = jax.lax.dot_general(
        w1, x, dimension_numbers=(((1,), (1,)), ((), ())),
        preferred_element_type=f32) + b1                            # (n2, blk)
    t = jnp.tanh(z1)                                                # folded sigmoid

    z2 = jnp.dot(w2, t.astype(bf16), preferred_element_type=f32) + b2   # (n3, blk)
    # Softplus matching F.softplus (threshold=20); exp may overflow to +inf for
    # z2 > 20 but that branch is discarded by the select (no NaN path).
    h2 = jnp.where(z2 > 20.0, z2, jnp.log1p(jnp.exp(z2)))

    # Layer 3 stays on the MXU; if a bundle dump shows vmatmul cadence binding
    # (v6e/v7x) this could become a VPU mul + XLU sublane reduce instead.
    out = jnp.dot(w3, h2.astype(bf16), preferred_element_type=f32) + b3  # (1, blk)
    out_ref[...] = out.astype(out_ref.dtype)                        # lane-dense store


@functools.partial(jax.jit, static_argnames=("block_b",))
def gcm_forward(x, w1, b1, w2, b2, w3, b3, block_b=4096):
    """GCM forward. x: (B, n1). Weights in PyTorch layout (out, in); biases (out, 1).

    block_b: batch-lane tile size (multiple of 128).
    """
    B, n1 = x.shape

    # Batch tile: multiple of 128, capped at block_b, but never so large that
    # the grid collapses to one step (keep >= 2 steps so v7x's two TensorCores
    # both get work on the "parallel" axis).
    blk = max(128, min(block_b, pl.cdiv(B, 2 * 128) * 128))
    grid = (pl.cdiv(B, blk),)   # ragged last block: padded read, masked store

    def full(a):
        # Tiny parameter: whole tensor resident in VMEM, never re-fetched.
        return pl.BlockSpec(a.shape, lambda i: (0, 0))

    out_t = pl.pallas_call(
        gcm_kernel,
        out_shape=jax.ShapeDtypeStruct((1, B), x.dtype),
        grid_spec=pltpu.PrefetchScalarGridSpec(
            num_scalar_prefetch=0,
            grid=grid,
            in_specs=[
                pl.BlockSpec((blk, n1), lambda i: (i, 0)),   # x read untransposed
                full(w1), full(b1),                          # layer 1
                full(w2), full(b2),                          # layer 2
                full(w3), full(b3),                          # layer 3
            ],
            out_specs=pl.BlockSpec((1, blk), lambda i: (0, i)),
        ),
        compiler_params=pltpu.CompilerParams(
            dimension_semantics=("parallel",),
            vmem_limit_bytes=32 * 1024 * 1024),
    )(x, w1, b1, w2, b2, w3, b3)

    return out_t.T                                                   # (B, 1)


def init_gcm_params(key, n1, n2, n3, dtype=jnp.float32):
    """Init mimicking nn.Linear default (uniform +-1/sqrt(fan_in)).

    Weights in PyTorch layout (out_features, in_features); biases (out_features, 1).
    """
    ks = jax.random.split(key, 6)

    def lin(kw, kb, fan_in, fan_out):
        bound = 1.0 / jnp.sqrt(jnp.asarray(fan_in, dtype))
        w = jax.random.uniform(kw, (fan_out, fan_in), dtype, -bound, bound)
        b = jax.random.uniform(kb, (fan_out, 1), dtype, -bound, bound)
        return w, b

    w1, b1 = lin(ks[0], ks[1], n1, n2)
    w2, b2 = lin(ks[2], ks[3], n2, n3)
    w3, b3 = lin(ks[4], ks[5], n3, 1)
    return w1, b1, w2, b2, w3, b3


def gcm_reference(x, w1, b1, w2, b2, w3, b3):
    """Pure-f32 reference matching the PyTorch module semantics."""
    h1 = jax.nn.sigmoid(x @ w1.T + b1.T)
    h2 = jax.nn.softplus(h1 @ w2.T + b2.T)
    return h2 @ w3.T + b3.T


def gcm_matched_reference(x, w1, b1, w2, b2, w3, b3):
    """Reference using the same bf16-operand / f32-accumulate math as the kernel."""
    f32, bf16 = jnp.float32, jnp.bfloat16
    w1h, b1h = (0.5 * w1).astype(bf16), 0.5 * b1
    w2h = (0.5 * w2).astype(bf16)
    b2f = b2 + 0.5 * jnp.sum(w2, axis=1, keepdims=True)
    w3b = w3.astype(bf16)
    z1 = jax.lax.dot_general(w1h, x.astype(bf16), (((1,), (1,)), ((), ())),
                             preferred_element_type=f32) + b1h
    t = jnp.tanh(z1)
    z2 = jnp.dot(w2h, t.astype(bf16), preferred_element_type=f32) + b2f
    h2 = jnp.where(z2 > 20.0, z2, jnp.log1p(jnp.exp(z2)))
    out = jnp.dot(w3b, h2.astype(bf16), preferred_element_type=f32) + b3
    return out.T


if __name__ == "__main__":
    n1, n2, n3 = 32, 64, 16
    B = 300  # not a multiple of 128 -> exercises the ragged last block

    key = jax.random.PRNGKey(0)
    kx, kp = jax.random.split(key)
    x = jax.random.normal(kx, (B, n1), jnp.float32)
    params = init_gcm_params(kp, n1, n2, n3)

    ref_bf16 = gcm_matched_reference(x, *params)   # same bf16-matmul math
    ref_f32 = gcm_reference(x, *params)            # module semantics, pure f32

    out = jax.block_until_ready(gcm_forward(x, *params))
    assert out.shape == (B, 1), out.shape
    assert jnp.allclose(out, ref_bf16, atol=5e-3, rtol=5e-3), (
        f"vs bf16 ref: max abs err {jnp.max(jnp.abs(out - ref_bf16))}")
    assert jnp.allclose(out, ref_f32, atol=5e-2, rtol=5e-2), (
        f"vs f32 ref: max abs err {jnp.max(jnp.abs(out - ref_f32))}")

    # Smaller tile -> multi-step grid with a ragged last block.
    out_tiled = jax.block_until_ready(gcm_forward(x, *params, block_b=128))
    assert jnp.allclose(out_tiled, ref_bf16, atol=5e-3, rtol=5e-3), (
        f"tiled vs bf16 ref: max abs err {jnp.max(jnp.abs(out_tiled - ref_bf16))}")

    print("KERNEL_OK")
</pallas_src>

<mosaic_0001>
module attributes {stable_mosaic.version = 11 : i64} {
  func.func @gcm_kernel(%arg0: i32, %arg1: memref<256x32xf32, #tpu.memory_space<vmem>>, %arg2: memref<64x32xf32, #tpu.memory_space<vmem>>, %arg3: memref<64x1xf32, #tpu.memory_space<vmem>>, %arg4: memref<16x64xf32, #tpu.memory_space<vmem>>, %arg5: memref<16x1xf32, #tpu.memory_space<vmem>>, %arg6: memref<1x16xf32, #tpu.memory_space<vmem>>, %arg7: memref<1x1xf32, #tpu.memory_space<vmem>>, %arg8: memref<1x256xf32, #tpu.memory_space<vmem>>) attributes {dimension_semantics = [#tpu.dimension_semantics<parallel>], iteration_bounds = array<i64: 2>, scalar_prefetch = 0 : i64, scratch_operands = 0 : i64, tpu.core_type = #tpu.core_type<tc>, window_params = [{transform_indices = @transform_0, window_bounds = array<i64: 256, 32>}, {pipeline_mode = #tpu.pipeline_mode<synchronous>, transform_indices = @transform_1, window_bounds = array<i64: 64, 32>}, {pipeline_mode = #tpu.pipeline_mode<synchronous>, transform_indices = @transform_2, window_bounds = array<i64: 64, 1>}, {pipeline_mode = #tpu.pipeline_mode<synchronous>, transform_indices = @transform_3, window_bounds = array<i64: 16, 64>}, {pipeline_mode = #tpu.pipeline_mode<synchronous>, transform_indices = @transform_4, window_bounds = array<i64: 16, 1>}, {pipeline_mode = #tpu.pipeline_mode<synchronous>, transform_indices = @transform_5, window_bounds = array<i64: 1, 16>}, {pipeline_mode = #tpu.pipeline_mode<synchronous>, transform_indices = @transform_6, window_bounds = array<i64: 1, 1>}, {transform_indices = @transform_7, window_bounds = array<i64: 1, 256>}]} {
    %c0 = arith.constant 0 : index
    %c0_0 = arith.constant 0 : index
    %0 = vector.load %arg2[%c0, %c0_0] : memref<64x32xf32, #tpu.memory_space<vmem>>, vector<64x32xf32>
    %cst = arith.constant 5.000000e-01 : f32
    %1 = vector.broadcast %cst : f32 to vector<64x32xf32>
    %2 = arith.mulf %0, %1 : vector<64x32xf32>
    %3 = arith.truncf %2 : vector<64x32xf32> to vector<64x32xbf16>
    %c0_1 = arith.constant 0 : index
    %c0_2 = arith.constant 0 : index
    %4 = vector.load %arg3[%c0_1, %c0_2] : memref<64x1xf32, #tpu.memory_space<vmem>>, vector<64x1xf32>
    %cst_3 = arith.constant 5.000000e-01 : f32
    %5 = vector.broadcast %cst_3 : f32 to vector<64x1xf32>
    %6 = arith.mulf %4, %5 : vector<64x1xf32>
    %c0_4 = arith.constant 0 : index
    %c0_5 = arith.constant 0 : index
    %7 = vector.load %arg4[%c0_4, %c0_5] : memref<16x64xf32, #tpu.memory_space<vmem>>, vector<16x64xf32>
    %cst_6 = arith.constant 5.000000e-01 : f32
    %8 = vector.broadcast %cst_6 : f32 to vector<16x64xf32>
    %9 = arith.mulf %7, %8 : vector<16x64xf32>
    %10 = arith.truncf %9 : vector<16x64xf32> to vector<16x64xbf16>
    %c0_7 = arith.constant 0 : index
    %c0_8 = arith.constant 0 : index
    %11 = vector.load %arg5[%c0_7, %c0_8] : memref<16x1xf32, #tpu.memory_space<vmem>>, vector<16x1xf32>
    %cst_9 = arith.constant dense<0.000000e+00> : vector<16xf32>
    %12 = vector.multi_reduction <add>, %7, %cst_9 [1] : vector<16x64xf32> to vector<16xf32>
    %13 = vector.shape_cast %12 : vector<16xf32> to vector<16x1xf32>
    %cst_10 = arith.constant 5.000000e-01 : f32
    %14 = vector.broadcast %cst_10 : f32 to vector<16x1xf32>
    %15 = arith.mulf %14, %13 : vector<16x1xf32>
    %16 = arith.addf %11, %15 : vector<16x1xf32>
    %c0_11 = arith.constant 0 : index
    %c0_12 = arith.constant 0 : index
    %17 = vector.load %arg6[%c0_11, %c0_12] : memref<1x16xf32, #tpu.memory_space<vmem>>, vector<1x16xf32>
    %18 = arith.truncf %17 : vector<1x16xf32> to vector<1x16xbf16>
    %c0_13 = arith.constant 0 : index
    %c0_14 = arith.constant 0 : index
    %19 = vector.load %arg7[%c0_13, %c0_14] : memref<1x1xf32, #tpu.memory_space<vmem>>, vector<1x1xf32>
    %c0_15 = arith.constant 0 : index
    %c0_16 = arith.constant 0 : index
    %20 = vector.load %arg1[%c0_15, %c0_16] : memref<256x32xf32, #tpu.memory_space<vmem>>, vector<256x32xf32>
    %21 = arith.truncf %20 : vector<256x32xf32> to vector<256x32xbf16>
    %cst_17 = arith.constant dense<0.000000e+00> : vector<64x256xf32>
    %22 = tpu.matmul %3, %21, %cst_17 {dimension_numbers = #tpu.dot_dimension_numbers<[1], [1], [0], [0], [0, 0, 1, 0], [], []>} : vector<64x32xbf16>, vector<256x32xbf16>, vector<64x256xf32> -> vector<64x256xf32>
    %23 = vector.broadcast %6 : vector<64x1xf32> to vector<64x256xf32>
    %24 = arith.addf %22, %23 : vector<64x256xf32>
    %25 = math.tanh %24 : vector<64x256xf32>
    %26 = arith.truncf %25 : vector<64x256xf32> to vector<64x256xbf16>
    %cst_18 = arith.constant dense<0.000000e+00> : vector<16x256xf32>
    %27 = tpu.matmul %10, %26, %cst_18 {dimension_numbers = #tpu.dot_dimension_numbers<[1], [0], [0], [1], [0, 0, 1, 1], [], []>} : vector<16x64xbf16>, vector<64x256xbf16>, vector<16x256xf32> -> vector<16x256xf32>
    %28 = vector.broadcast %16 : vector<16x1xf32> to vector<16x256xf32>
    %29 = arith.addf %27, %28 : vector<16x256xf32>
    %cst_19 = arith.constant 2.000000e+01 : f32
    %30 = vector.broadcast %cst_19 : f32 to vector<16x256xf32>
    %31 = arith.cmpf ogt, %29, %30 : vector<16x256xf32>
    %32 = math.exp %29 : vector<16x256xf32>
    %33 = math.log1p %32 : vector<16x256xf32>
    %34 = arith.select %31, %29, %33 : vector<16x256xi1>, vector<16x256xf32>
    %35 = arith.truncf %34 : vector<16x256xf32> to vector<16x256xbf16>
    %cst_20 = arith.constant dense<0.000000e+00> : vector<1x256xf32>
    %36 = tpu.matmul %18, %35, %cst_20 {dimension_numbers = #tpu.dot_dimension_numbers<[1], [0], [0], [1], [0, 0, 1, 1], [], []>} : vector<1x16xbf16>, vector<16x256xbf16>, vector<1x256xf32> -> vector<1x256xf32>
    %37 = vector.broadcast %19 : vector<1x1xf32> to vector<1x256xf32>
    %38 = arith.addf %36, %37 : vector<1x256xf32>
    %c0_21 = arith.constant 0 : index
    %c0_22 = arith.constant 0 : index
    %39 = vector.load %arg8[%c0_21, %c0_22] : memref<1x256xf32, #tpu.memory_space<vmem>>, vector<1x256xf32>
    tpu.vector_store %arg8[%c0_21, %c0_22], %38 {strides = array<i32>} : memref<1x256xf32, #tpu.memory_space<vmem>>, vector<1x256xf32>,
    return
  }
  func.func @transform_0(%arg0: i32) -> (i32, i32) {
    %c0_i32 = arith.constant 0 : i32
    %c0_i32_0 = arith.constant 0 : i32
    return %arg0, %c0_i32 : i32, i32
  }
  func.func @transform_1(%arg0: i32) -> (i32, i32) {
    %c0_i32 = arith.constant 0 : i32
    %c0_i32_0 = arith.constant 0 : i32
    %c0_i32_1 = arith.constant 0 : i32
    return %c0_i32, %c0_i32_0 : i32, i32
  }
  func.func @transform_2(%arg0: i32) -> (i32, i32) {
    %c0_i32 = arith.constant 0 : i32
    %c0_i32_0 = arith.constant 0 : i32
    %c0_i32_1 = arith.constant 0 : i32
    return %c0_i32, %c0_i32_0 : i32, i32
  }
  func.func @transform_3(%arg0: i32) -> (i32, i32) {
    %c0_i32 = arith.constant 0 : i32
    %c0_i32_0 = arith.constant 0 : i32
    %c0_i32_1 = arith.constant 0 : i32
    return %c0_i32, %c0_i32_0 : i32, i32
  }
  func.func @transform_4(%arg0: i32) -> (i32, i32) {
    %c0_i32 = arith.constant 0 : i32
    %c0_i32_0 = arith.constant 0 : i32
    %c0_i32_1 = arith.constant 0 : i32
    return %c0_i32, %c0_i32_0 : i32, i32
  }
  func.func @transform_5(%arg0: i32) -> (i32, i32) {
    %c0_i32 = arith.constant 0 : i32
    %c0_i32_0 = arith.constant 0 : i32
    %c0_i32_1 = arith.constant 0 : i32
    return %c0_i32, %c0_i32_0 : i32, i32
  }
  func.func @transform_6(%arg0: i32) -> (i32, i32) {
    %c0_i32 = arith.constant 0 : i32
    %c0_i32_0 = arith.constant 0 : i32
    %c0_i32_1 = arith.constant 0 : i32
    return %c0_i32, %c0_i32_0 : i32, i32
  }
  func.func @transform_7(%arg0: i32) -> (i32, i32) {
    %c0_i32 = arith.constant 0 : i32
    %c0_i32_0 = arith.constant 0 : i32
    return %c0_i32, %arg0 : i32, i32
  }
}

</mosaic_0001>

<bundles_post_ra>
// kernel: gcm_forward.1
= control target key start
LH: loop header
LB: loop body
LE: loop exit
PB: predicated region body
PF: predicated region fallthrough
CT: control target
= control target key end

     0   :  { %s1408_s0 = inlined_call_operand.vmem [shape: f32[300,32], index: 0, kind: input, shape index: {}]   ;;  %s1409_s1 = inlined_call_operand.vmem [shape: f32[64,32], index: 1, kind: input, shape index: {}]   ;;  %s1410_s2 = inlined_call_operand.vmem [shape: f32[64,1], index: 2, kind: input, shape index: {}]   ;;  %s1411_s3 = inlined_call_operand.vmem [shape: f32[16,64], index: 3, kind: input, shape index: {}]   ;;  %s1412_s4 = inlined_call_operand.vmem [shape: f32[16,1], index: 4, kind: input, shape index: {}]   ;;  %s1413_s5 = inlined_call_operand.vmem [shape: f32[1,16], index: 5, kind: input, shape index: {}]   ;;  %s1414_s6 = inlined_call_operand.<no memory space> [shape: f32[1,1], index: 6, kind: input, shape index: {}]   ;;  %s1415_s7 = inlined_call_operand.hbm [shape: f32[1,300], index: 7, kind: output, shape index: {}]  }
   0x1   :  { %v12_v0 = vstv %s1414_s6 }
   0x2   :  { %13 = vst [vmem:[#allocation2] sm:$0x1] %v12_v0 }
   0x3   :  { %14 = vsyncpa [#allocation4], 0 }
   0x4   :  { %16 = vsyncpa [#allocation4 + $0x1], 0  ;;  %s1129_s26 = smov 0   ;;  %s1131_s27 = smov 0  }
   0x5   :  { %s1133_s28 = smov 0   ;;  %s1135_s29 = smov 0  }
   0x6 LB: > { %s1150_s6 = sadd.s32 4294967295, %s1081_s29   ;;  %s876_s30 = sadd.s32 4294967294, %s1081_s29   ;;  %s1081_s29 = sphi %s1135_s29, %s1423_s29   ;;  %s1077_s28 = sphi %s1133_s28, %s1422_s28   ;;  %s1073_s27 = sphi %s1131_s27, %s1421_s27   ;;  %s1069_s26 = sphi %s1129_s26, %s1420_s26  }
   0x7   : > { %s1154_s8 = sadd.s32 1, %s1081_s29   ;;  %s181_s9 = sadd.s32 1, %s1077_s28 }
   0x8   : > { %s178_s10 = ssub.s32 %s1081_s29, %s1154_s8  ;;  %p191_p0 = scmp.ne.s32.totalorder %s1077_s28, %s1073_s27 }
   0x9   : > { %p179_p1 = scmp.eq.s32.totalorder %s178_s10, 0  ;;  %p192_p2 = scmp.eq.s32.totalorder %s1150_s6, 1 }
   0xa   : > { %p197_p3 = scmp.ne.s32.totalorder %s1073_s27, %s1069_s26  ;;  %p198_p4 = scmp.eq.s32.totalorder %s876_s30, 1 }
   0xb   : > { %s1165_s11 = scalar_select %p179_p1, %s1077_s28, %s181_s9  }
   0xc   : > { %p1167_p5 = por %p192_p2, %p191_p0  ;;  %p1171_p6 = por %p198_p4, %p197_p3 }
   0xd   : > { %p879_p7 = scmp.ge.s32.totalorder %s1081_s29, 1  ;;  %p251_p8 = scmp.lt.s32.totalorder %s1081_s29, 3 }
   0xf   : > { %p252_p9 = pnand %p879_p7, %p251_p8 }
  0x10   : > { %v329_v1 = vld [vmem:[%s1410_s2 + $0x10] sm:$0xff] (!%p252_p9)  ;;  %v327_v2 = vld [vmem:[%s1410_s2] sm:$0xff] (!%p252_p9)  ;;  %v330_v3 = vld [vmem:[%s1410_s2 + $0x18] sm:$0xff] (!%p252_p9)  ;;  %s1187_s20 = sshll.u32 (!%p252_p9), %s1150_s6, 5  ;;  %v1083_v4 = vmov (!%p252_p9), 0   ;;  %vm452_vm0 = vcmask (!%p252_p9), 261120  }
  0x11   : > { %255 = sbr.rel (%p252_p9) target bundleno = 856 (0x358), region = 48  ;;  %970 = vset.pattern.permute.xlu1 (!%p252_p9), %v1083_v4  ;;  %969 = vset.pattern.permute.xlu0 (!%p252_p9), %v1083_v4  ;;  %v337_v5 = vmul.f32 (!%p252_p9), 0.5, %v329_v1  ;;  %v335_v6 = vmul.f32 (!%p252_p9), 0.5, %v327_v2  ;;  %v328_v7 = vld [vmem:[%s1410_s2 + $0x8] sm:$0xff] (!%p252_p9)  ;;  %p292_p10 = scmp.lt.s32.totalorder (!%p252_p9), %s1187_s20, 37  ;;  %v338_v8 = vmul.f32 (!%p252_p9), 0.5, %v330_v3 }
  0x12   : > { %655 = vmatprep.mubr.bf16.mxu1 (!%p252_p9), %v1083_v4  ;;  %v336_v9 = vmul.f32 (!%p252_p9), 0.5, %v328_v7  ;;  %v332_v10 = vld [vmem:[%s1410_s2 + $0x28] sm:$0xff] (!%p252_p9)  ;;  %v1203_v11 = vld [vmem:[%s1411_s3] sm:$0xff] (!%p252_p9)  ;;  %v334_v20 = vld [vmem:[%s1410_s2 + $0x38] sm:$0xff] (!%p252_p9)  ;;  %vm350_vm1 = vcmask (!%p252_p9), 523264   ;;  %vm729_vm10 = vcmask (!%p252_p9), 130048  }
  0x13   : > { %424 = vperm.xlu1 (!%p252_p9), %970, %v337_v5   ;;  %414 = vperm.xlu0 (!%p252_p9), %969, %v335_v6   ;;  %v1208_v12 = vld [vmem:[%s1411_s3 + $0x8] sm:$0xff] (!%p252_p9)  ;;  %v331_v13 = vld [vmem:[%s1410_s2 + $0x20] sm:$0xff] (!%p252_p9)  ;;  %v1214_v14 = vmul.f32 (!%p252_p9), 0.5, %v1203_v11  ;;  %v333_v21 = vld [vmem:[%s1410_s2 + $0x30] sm:$0xff] (!%p252_p9)  ;;  %v340_v25 = vmul.f32 (!%p252_p9), 0.5, %v332_v10  ;;  %v342_v38 = vmul.f32 (!%p252_p9), 0.5, %v334_v20 }
  0x14   : > { %v1217_v15 = vmul.f32 (!%p252_p9), 0.5, %v1208_v12  ;;  %v307_v16 = vld [vmem:[%s1409_s1] sm:$0xff] (!%p252_p9)  ;;  %v308_v17 = vld [vmem:[%s1409_s1 + $0x8] sm:$0xff] (!%p252_p9)  ;;  %v339_v26 = vmul.f32 (!%p252_p9), 0.5, %v331_v13  ;;  %v341_v39 = vmul.f32 (!%p252_p9), 0.5, %v333_v21  ;;  %v351_v5 = vsel (!%p252_p9), %vm350_vm1, %v1203_v11, 0.0 }
  0x15   : > { %v315_v18 = vmul.f32 (!%p252_p9), 0.5, %v307_v16  ;;  %v316_v19 = vmul.f32 (!%p252_p9), 0.5, %v308_v17  ;;  %s284_s19 = sand.u32 (!%p252_p9), 1, %s1073_s27  }
  0x16   : > { %v347_v22 = vpack.c.bf16 (!%p252_p9), %v1217_v15, %v1214_v14  ;;  %s880_s21 = sshll.u32 (!%p252_p9), %s284_s19, 1  ;;  %s1354_s24 = scalar_lea.sflag (!%p252_p9), [#allocation4], %s284_s19 }
  0x17   : > { %429 = vperm.xlu1 (!%p252_p9), %970, %v338_v8   ;;  %419 = vperm.xlu0 (!%p252_p9), %969, %v336_v9   ;;  %v1241_v28 = vpack.c.bf16 (!%p252_p9), %v316_v19, %v315_v18  ;;  %v354_v9 = vsel (!%p252_p9), %vm350_vm1, %v1208_v12, 0.0 }
  0x18   : > { %s293_s23 = scalar_select %p292_p10, %s1187_s20, 37 }
  0x19   : > { %913 = vmatprep.mubr.msk.bf16.mxu0 %vm452_vm0, %v1241_v28  ;;  %s890_s25 = sshll.u32 (%p1167_p5), %s1150_s6, 1 }
  0x1a   : > { %s882_s22 = sshll.u32 %s293_s23, 3 }
  0x1b   : > { %s1228_s30 = scalar_lea.vmem %s1408_s0, %s882_s22  ;;  %439 = vperm.xlu1 %970, %v340_v25   ;;  %434 = vperm.xlu0 %969, %v339_v26   ;;  %v309_v26 = vld [vmem:[%s1409_s1 + $0x10] sm:$0xff]  ;;  %s286_s22 = scalar_lea.vmem [#allocation3], %s880_s21 }
  0x1c   : > { %v380_v23 = vld [vmem:[%s1228_s30 + $0x80] sm:$0xff]  ;;  %v381_v24 = vld [vmem:[%s1228_s30 + $0x88] sm:$0xff]  ;;  %v382_v31 = vld [vmem:[%s1228_s30 + $0x90] sm:$0xff] }
  0x1d   : > { %v364_v27 = vld [vmem:[%s1228_s30] sm:$0xff]  ;;  %v404_v29 = vpack.c.bf16 %v381_v24, %v380_v23  ;;  %v365_v30 = vld [vmem:[%s1228_s30 + $0x8] sm:$0xff]  ;;  %v383_v32 = vld [vmem:[%s1228_s30 + $0x98] sm:$0xff] }
  0x1e   : > { %v396_v33 = vpack.c.bf16 %v365_v30, %v364_v27  ;;  %v405_v34 = vpack.c.bf16 %v383_v32, %v382_v31  ;;  %v366_v35 = vld [vmem:[%s1228_s30 + $0x10] sm:$0xff]  ;;  %v367_v36 = vld [vmem:[%s1228_s30 + $0x18] sm:$0xff]  ;;  %v384_v41 = vld [vmem:[%s1228_s30 + $0xa0] sm:$0xff] }
  0x1f   : > { %921 = vmatprep.subr.msk.bf16.mxu0 %vm452_vm0, %v404_v29  ;;  %v397_v40 = vpack.c.bf16 %v367_v36, %v366_v35  ;;  %v385_v42 = vld [vmem:[%s1228_s30 + $0xa8] sm:$0xff]  ;;  %449 = vperm.xlu1 %970, %v342_v38   ;;  %v368_v45 = vld [vmem:[%s1228_s30 + $0x20] sm:$0xff]  ;;  %v386_v48 = vld [vmem:[%s1228_s30 + $0xb0] sm:$0xff]  ;;  %v317_v29 = vmul.f32 0.5, %v309_v26 }
  0x20   : > { %v466_v37 = vsel %vm452_vm0, %v396_v33, 0  ;;  %444 = vperm.xlu0 %969, %v341_v39   ;;  %v406_v44 = vpack.c.bf16 %v385_v42, %v384_v41  ;;  %v369_v46 = vld [vmem:[%s1228_s30 + $0x28] sm:$0xff]  ;;  %v387_v49 = vld [vmem:[%s1228_s30 + $0xb8] sm:$0xff]  ;;  %v370_v52 = vld [vmem:[%s1228_s30 + $0x30] sm:$0xff] }
  0x21   : > { %898 = vmatpush3.bf16.xpose.msra.mxu0 %v466_v37  ;;  %v469_v43 = vsel %vm452_vm0, %v397_v40, 0  ;;  %v398_v47 = vpack.c.bf16 %v369_v46, %v368_v45  ;;  %v407_v51 = vpack.c.bf16 %v387_v49, %v386_v48  ;;  %v371_v53 = vld [vmem:[%s1228_s30 + $0x38] sm:$0xff]  ;;  %v388_v55 = vld [vmem:[%s1228_s30 + $0xc0] sm:$0xff]  ;;  %v389_v56 = vld [vmem:[%s1228_s30 + $0xc8] sm:$0xff] }
  0x22   : > { %922 = vmatprep.subr.msk.bf16.mxu0 %vm452_vm0, %v405_v34  ;;  %v399_v54 = vpack.c.bf16 %v371_v53, %v370_v52  ;;  %v408_v58 = vpack.c.bf16 %v389_v56, %v388_v55  ;;  %v372_v59 = vld [vmem:[%s1228_s30 + $0x40] sm:$0xff]  ;;  %v373_v60 = vld [vmem:[%s1228_s30 + $0x48] sm:$0xff]  ;;  %v390_v62 = vld [vmem:[%s1228_s30 + $0xd0] sm:$0xff] }
  0x23   : > { %v472_v50 = vsel %vm452_vm0, %v398_v47, 0  ;;  %v400_v61 = vpack.c.bf16 %v373_v60, %v372_v59  ;;  %v391_v63 = vld [vmem:[%s1228_s30 + $0xd8] sm:$0xff]  ;;  %v374_v2 = vld [vmem:[%s1228_s30 + $0x50] sm:$0xff]  ;;  %v392_v7 = vld [vmem:[%s1228_s30 + $0xe0] sm:$0xff] }
  0x24   : > { %v475_v57 = vsel %vm452_vm0, %v399_v54, 0  ;;  %v409_v1 = vpack.c.bf16 %v391_v63, %v390_v62  ;;  %v375_v3 = vld [vmem:[%s1228_s30 + $0x58] sm:$0xff]  ;;  %v393_v8 = vld [vmem:[%s1228_s30 + $0xe8] sm:$0xff]  ;;  %v376_v16 = vld [vmem:[%s1228_s30 + $0x60] sm:$0xff] }
  0x25   : > { %v478_v0 = vsel %vm452_vm0, %v400_v61, 0  ;;  %v401_v6 = vpack.c.bf16 %v375_v3, %v374_v2  ;;  %v410_v13 = vpack.c.bf16 %v393_v8, %v392_v7  ;;  %v377_v17 = vld [vmem:[%s1228_s30 + $0x68] sm:$0xff]  ;;  %v394_v18 = vld [vmem:[%s1228_s30 + $0xf0] sm:$0xff]  ;;  %v395_v19 = vld [vmem:[%s1228_s30 + $0xf8] sm:$0xff] }
  0x26   : > { %v402_v11 = vpack.c.bf16 %v377_v17, %v376_v16  ;;  %v411_v21 = vpack.c.bf16 %v395_v19, %v394_v18  ;;  %v378_v23 = vld [vmem:[%s1228_s30 + $0x70] sm:$0xff]  ;;  %v379_v24 = vld [vmem:[%s1228_s30 + $0x78] sm:$0xff]  ;;  %v311_v32 = vld [vmem:[%s1409_s1 + $0x20] sm:$0xff]  ;;  %s806_s30 = ssub.s32 (%p1167_p5), 3, %s890_s25 }
  0x27   : > { %v481_v10 = vsel %vm452_vm0, %v401_v6, 0  ;;  %v403_v12 = vpack.c.bf16 %v379_v24, %v378_v23  ;;  %v310_v27 = vld [vmem:[%s1409_s1 + $0x18] sm:$0xff]  ;;  %v312_v33 = vld [vmem:[%s1409_s1 + $0x28] sm:$0xff]  ;;  %v319_v34 = vmul.f32 0.5, %v311_v32  ;;  %v313_v37 = vld [vmem:[%s1409_s1 + $0x30] sm:$0xff]  ;;  %p807_p11 = scmp.lt.s32.totalorder (%p1167_p5), %s806_s30, 2 }
  0x28   : > { %v484_v20 = vsel %vm452_vm0, %v402_v11, 0  ;;  %v318_v30 = vmul.f32 0.5, %v310_v27  ;;  %v320_v35 = vmul.f32 0.5, %v312_v33  ;;  %v314_v38 = vld [vmem:[%s1409_s1 + $0x38] sm:$0xff]  ;;  %v321_v39 = vmul.f32 0.5, %v313_v37  ;;  %v348_v49 = vld [vmem:[%s1412_s4] sm:$0xff] }
  0x29   : > { %900 = vmatpush3.bf16.xpose.msra.mxu0 %v469_v43  ;;  %v487_v25 = vsel %vm452_vm0, %v403_v12, 0  ;;  %v322_v40 = vmul.f32 0.5, %v314_v38  ;;  %v349_v53 = vld [vmem:[%s1412_s4 + $0x8] sm:$0xff]  ;;  %v363_v56 = vld [vmem:[#allocation2] sm:$0x1] }
  0x2a   : > { %923 = vmatprep.subr.msk.bf16.mxu0 %vm452_vm0, %v406_v44  ;;  %v324_v31 = vpack.c.bf16 %v318_v30, %v317_v29  ;;  %v325_v36 = vpack.c.bf16 %v320_v35, %v319_v34 }
  0x31   : > { %902 = vmatpush3.bf16.xpose.msra.mxu0 %v472_v50 }
  0x32   : > { %924 = vmatprep.subr.msk.bf16.mxu0 %vm452_vm0, %v407_v51 }
  0x39   : > { %904 = vmatpush3.bf16.xpose.msra.mxu0 %v475_v57 }
  0x3a   : > { %925 = vmatprep.subr.msk.bf16.mxu0 %vm452_vm0, %v408_v58 }
  0x3f   : > { %352 = vadd.xlane.f32.xlu0 %v351_v5 }
  0x41   : > { %906 = vmatpush3.bf16.xpose.msra.mxu0 %v478_v0 }
  0x42   : > { %926 = vmatprep.subr.msk.bf16.mxu0 %vm452_vm0, %v409_v1 }
  0x43   : > { %355 = vadd.xlane.f32.xlu1 %v354_v9 }
  0x49   : > { %908 = vmatpush3.bf16.xpose.msra.mxu0 %v481_v10 }
  0x4a   : > { %927 = vmatprep.subr.msk.bf16.mxu0 %vm452_vm0, %v410_v13 }
  0x51   : > { %910 = vmatpush3.bf16.xpose.msra.mxu0 %v484_v20 }
  0x52   : > { %928 = vmatprep.subr.msk.bf16.mxu0 %vm452_vm0, %v411_v21 }
  0x59   : > { %912 = vmatpush3.bf16.xpose.msra.mxu0 %v487_v25 }
  0x60   : > { %914 = vmatmul.mubr.msk.bf16.vlgmr.msra.gmra.mrb[0].mxu0 %vm452_vm0, %v1241_v28  ;;  %v326_v28 = vpack.c.bf16 %v322_v40, %v321_v39 }
  0x61   : > { %915 = vmatprep.mubr.msk.bf16.mxu0 %vm452_vm0, %v324_v31 }
  0x68   : > { %916 = vmatmul.mubr.msk.bf16.gmra.mrb[4].mxu0 %vm452_vm0, %v324_v31 }
  0x69   : > { %917 = vmatprep.mubr.msk.bf16.mxu0 %vm452_vm0, %v325_v36 }
  0x70   : > { %918 = vmatmul.mubr.msk.bf16.gmra.mrb[8].mxu0 %vm452_vm0, %v325_v36 }
  0x71   : > { %919 = vmatprep.mubr.msk.bf16.mxu0 %vm452_vm0, %v326_v28 }
  0x78   : > { %920 = vmatmul.mubr.msk.bf16.gmra.mrb[12].mxu0 %vm452_vm0, %v326_v28 }
  0x92   : > { %v415_v41 = vpop.permute.xlu0 %414  ;;  %v425_v42 = vpop.permute.xlu1 %424 }
  0x96   : > { %v420_v43 = vpop.permute.xlu0 %419  ;;  %v430_v44 = vpop.permute.xlu1 %429 }
  0x9a   : > { %v435_v45 = vpop.permute.xlu0 %434  ;;  %v440_v46 = vpop.permute.xlu1 %439 }
  0x9e   : > { %v1322_v48 = vpop.permute.xlu1 %449 }
  0x9f   : > { %v1320_v47 = vpop.permute.xlu0 %444 }
  0xcc   : > { %v353_v50 = vpop.xlane.xlu0 %352 }
  0xcd   : > { %v357_v51 = vmul.f32 0.5, %v353_v50 }
  0xcf   : > { %v359_v52 = vadd.f32 %v357_v51, %v348_v49 }
  0xd0   : > { %v356_v54 = vpop.xlane.xlu1 %355 }
  0xd1   : > { %612 = vperm.xlu0 %969, %v359_v52   ;;  %v358_v55 = vmul.f32 0.5, %v356_v54 }
  0xd3   : > { %v360_v57 = vadd.f32 %v358_v55, %v349_v53 }
  0xd5   : > { %722 = vperm.xlu0 %969, %v363_v56   ;;  %617 = vperm.xlu1 %970, %v360_v57  }
 0x133   : > { %v547_v58 = vpop.f32.mrb[0].mxu0 }
 0x134   : > { %v548_v59 = vadd.f32 %v547_v58, %v415_v41  ;;  %v549_v60 = vpop.f32.mrb[1].mxu0 }
 0x135   : > { %v550_v61 = vadd.f32 %v549_v60, %v415_v41  ;;  %v551_v62 = vpop.f32.mrb[2].mxu0 }
 0x136   : > { %971 = vtanh.f32 %v548_v59  ;;  %v552_v63 = vadd.f32 %v551_v62, %v420_v43  ;;  %v553_v0 = vpop.f32.mrb[3].mxu0 }
 0x137   : > { %973 = vtanh.f32 %v550_v61  ;;  %v554_v1 = vadd.f32 %v553_v0, %v420_v43 }
 0x138   : > { %975 = vtanh.f32 %v552_v63 }
 0x139   : > { %977 = vtanh.f32 %v554_v1 }
 0x13b   : > { %v557_v2 = vpop.f32.mrb[4].mxu0 }
 0x13c   : > { %v558_v3 = vadd.f32 %v557_v2, %v425_v42  ;;  %v559_v5 = vpop.f32.mrb[5].mxu0 }
 0x13d   : > { %v560_v6 = vadd.f32 %v559_v5, %v425_v42  ;;  %v561_v7 = vpop.f32.mrb[6].mxu0 }
 0x13e   : > { %979 = vtanh.f32 %v558_v3  ;;  %v562_v8 = vadd.f32 %v561_v7, %v430_v44  ;;  %v563_v9 = vpop.f32.mrb[7].mxu0 }
 0x13f   : > { %981 = vtanh.f32 %v560_v6  ;;  %v564_v10 = vadd.f32 %v563_v9, %v430_v44 }
 0x140   : > { %v972_v13 = vpop.eup %971  ;;  %983 = vtanh.f32 %v562_v8 }
 0x141   : > { %v974_v16 = vpop.eup %973  ;;  %985 = vtanh.f32 %v564_v10 }
 0x142   : > { %v976_v17 = vpop.eup %975 }
 0x143   : > { %v978_v11 = vpop.eup %977  ;;  %v567_v18 = vpop.f32.mrb[8].mxu0  ;;  %v602_v19 = vpack.c.bf16 %v976_v17, %v972_v13 }
 0x144   : > { %v568_v20 = vadd.f32 %v567_v18, %v435_v45  ;;  %v569_v21 = vpop.f32.mrb[9].mxu0  ;;  %v603_v23 = vpack.c.bf16 %v978_v11, %v974_v16 }
 0x145   : > { %v570_v24 = vadd.f32 %v569_v21, %v435_v45  ;;  %v571_v12 = vpop.f32.mrb[10].mxu0 }
 0x146   : > { %987 = vtanh.f32 %v568_v20  ;;  %v572_v25 = vadd.f32 %v571_v12, %v440_v46  ;;  %v573_v26 = vpop.f32.mrb[11].mxu0  ;;  %623 = vmatprep.subr.bf16.mxu1 %v603_v23 }
 0x147   : > { %989 = vtanh.f32 %v570_v24  ;;  %v574_v27 = vadd.f32 %v573_v26, %v440_v46  ;;  %624 = vmatpush1.bf16.msra.mxu1 %v602_v19 }
 0x148   : > { %v980_v29 = vpop.eup %979  ;;  %991 = vtanh.f32 %v572_v25 }
 0x149   : > { %v982_v30 = vpop.eup %981  ;;  %993 = vtanh.f32 %v574_v27 }
 0x14a   : > { %v984_v31 = vpop.eup %983 }
 0x14b   : > { %v986_v32 = vpop.eup %985  ;;  %v577_v33 = vpop.f32.mrb[12].mxu0  ;;  %v604_v34 = vpack.c.bf16 %v984_v31, %v980_v29 }
 0x14c   : > { %v578_v35 = vadd.f32 %v577_v33, %v1320_v47  ;;  %v579_v36 = vpop.f32.mrb[13].mxu0  ;;  %v605_v37 = vpack.c.bf16 %v986_v32, %v982_v30 }
 0x14d   : > { %v580_v38 = vadd.f32 %v579_v36, %v1320_v47  ;;  %v581_v39 = vpop.f32.mrb[14].mxu0 }
 0x14e   : > { %995 = vtanh.f32 %v578_v35  ;;  %v582_v40 = vadd.f32 %v581_v39, %v1322_v48  ;;  %v583_v28 = vpop.f32.mrb[15].mxu0  ;;  %625 = vmatprep.subr.bf16.mxu1 %v605_v37 }
 0x14f   : > { %997 = vtanh.f32 %v580_v38  ;;  %v584_v41 = vadd.f32 %v583_v28, %v1322_v48  ;;  %626 = vmatpush1.bf16.msra.mxu1 %v604_v34 }
 0x150   : > { %v988_v42 = vpop.eup %987  ;;  %999 = vtanh.f32 %v582_v40  ;;  %v613_v48 = vpop.permute.xlu0 %612 }
 0x151   : > { %v990_v43 = vpop.eup %989  ;;  %1001 = vtanh.f32 %v584_v41 }
 0x152   : > { %v992_v44 = vpop.eup %991 }
 0x153   : > { %v994_v45 = vpop.eup %993  ;;  %v606_v46 = vpack.c.bf16 %v992_v44, %v988_v42 }
 0x154   : > { %v607_v49 = vpack.c.bf16 %v994_v45, %v990_v43  ;;  %v618_v58 = vpop.permute.xlu1 %617 }
 0x156   : > { %627 = vmatprep.subr.bf16.mxu1 %v607_v49 }
 0x157   : > { %628 = vmatpush1.bf16.msra.mxu1 %v606_v46  ;;  %v361_v46 = vld [vmem:[%s1413_s5] sm:$0x1] }
 0x158   : > { %v996_v47 = vpop.eup %995 }
 0x159   : > { %v998_v50 = vpop.eup %997 }
 0x15a   : > { %v1000_v51 = vpop.eup %999 }
 0x15b   : > { %v1002_v52 = vpop.eup %1001  ;;  %v608_v53 = vpack.c.bf16 %v1000_v51, %v996_v47  ;;  %v362_v47 = vpack.c.bf16 %v361_v46, %v361_v46 }
 0x15c   : > { %v609_v54 = vpack.c.bf16 %v1002_v52, %v998_v50  ;;  %v725_v50 = vlaneseq  ;;  %v1084_v52 = vmov 1966171168  }
 0x15e   : > { %629 = vmatprep.subr.bf16.mxu1 %v609_v54  ;;  %v726_v51 = vshrl.u32 %v725_v50, 7  ;;  %vm794_vm11 = vcmp.lt.s32.totalorder %v725_v50, 256 }
 0x15f   : > { %630 = vmatpush1.bf16.msra.mxu1 %v608_v53  ;;  %v778_v53 = vunpack.c.l.s4 %v1084_v52 }
 0x160   : > { %v727_v54 = vsub.s32 0, %v726_v51 }
 0x162   : > { %887 = vmatmul.mubr.msk.bf16.vlgmr.msra.gmra.mrb[0].mxu1 %vm350_vm1, %v347_v22 }
 0x163   : > { %765 = vmatprep.mubr.bf16.mxu1 %v1083_v4 }
 0x235   : > { %v657_v55 = vpop.f32.mrb[0].mxu1 }
 0x236   : > { %v658_v56 = vadd.f32 %v657_v55, %v613_v48  ;;  %v659_v57 = vpop.f32.mrb[1].mxu1  ;;  %v779_v55 = vunpack.c.0.s8 %v778_v53 }
 0x237   : > { %v1339_v59 = vadd.f32 %v659_v57, %v613_v48  ;;  %v661_v60 = vpop.f32.mrb[2].mxu1  ;;  %v723_v48 = vpop.permute.xlu0 %722 }
 0x238   : > { %v670_v61 = vmul.f32 1.442695, %v658_v56  ;;  %v662_v62 = vadd.f32 %v661_v60, %v618_v58  ;;  %v663_v63 = vpop.f32.mrb[3].mxu1  ;;  %vm666_vm3 = vcmp.gt.f32.partialorder %v658_v56, 20.0 }
 0x239   : > { %v672_v0 = vmul.f32 1.442695, %v1339_v59  ;;  %v664_v1 = vadd.f32 %v663_v63, %v618_v58  ;;  %vm667_vm8 = vcmp.gt.f32.partialorder %v1339_v59, 20.0 }
 0x23a   : > { %1003 = vpow2.f32 %v670_v61  ;;  %v674_v14 = vmul.f32 1.442695, %v662_v62  ;;  %vm668_vm4 = vcmp.gt.f32.partialorder %v662_v62, 20.0  ;;  %v782_v61 = vsub.s32 %v779_v55, %v726_v51 }
 0x23b   : > { %1005 = vpow2.f32 %v672_v0  ;;  %v676_v15 = vmul.f32 1.442695, %v664_v1  ;;  %vm669_vm9 = vcmp.gt.f32.partialorder %v664_v1, 20.0 }
 0x23c   : > { %1007 = vpow2.f32 %v674_v14 }
 0x23d   : > { %1009 = vpow2.f32 %v676_v15 }
 0x244   : > { %v1004_v4 = vpop.eup %1003 }
 0x245   : > { %v1006_v22 = vpop.eup %1005  ;;  %v678_v2 = vadd.f32 1.0, %v1004_v4  ;;  %v681_v9 = vmul.f32 -0.5, %v1004_v4  ;;  %v684_v11 = vand.u32 2147483647, %v1004_v4 }
 0x246   : > { %v1008_v3 = vpop.eup %1007  ;;  %v687_v5 = vadd.f32 1.0, %v1006_v22  ;;  %v690_v13 = vmul.f32 -0.5, %v1006_v22  ;;  %v693_v23 = vand.u32 2147483647, %v1006_v22 }
 0x247   : > { %v1010_v6 = vpop.eup %1009  ;;  %1011 = vlog2.f32 %v678_v2  ;;  %v696_v7 = vadd.f32 1.0, %v1008_v3  ;;  %v699_v10 = vmul.f32 -0.5, %v1008_v3  ;;  %v682_v16 = vadd.f32 1.0, %v681_v9 }
 0x248   : > { %1013 = vlog2.f32 %v687_v5  ;;  %v705_v8 = vadd.f32 1.0, %v1010_v6  ;;  %v708_v17 = vmul.f32 -0.5, %v1010_v6  ;;  %v691_v19 = vadd.f32 1.0, %v690_v13 }
 0x249   : > { %1015 = vlog2.f32 %v696_v7  ;;  %v700_v18 = vadd.f32 1.0, %v699_v10  ;;  %v702_v21 = vand.u32 2147483647, %v1008_v3  ;;  %v683_v25 = vmul.f32 %v1004_v4, %v682_v16 }
 0x24a   : > { %1017 = vlog2.f32 %v705_v8  ;;  %v709_v26 = vadd.f32 1.0, %v708_v17  ;;  %vm1342_vm2 = vcmp.lt.f32.partialorder %v684_v11, 0.0004427343  ;;  %v711_v31 = vand.u32 2147483647, %v1010_v6 }
 0x24b   : > { %v701_v34 = vmul.f32 %v1008_v3, %v700_v18  ;;  %v692_v35 = vmul.f32 %v1006_v22, %v691_v19  ;;  %vm703_vm5 = vcmp.lt.f32.partialorder %v702_v21, 0.0004427343  ;;  %vm694_vm6 = vcmp.lt.f32.partialorder %v693_v23, 0.0004427343 }
 0x24c   : > { %v710_v40 = vmul.f32 %v1010_v6, %v709_v26  ;;  %vm712_vm7 = vcmp.lt.f32.partialorder %v711_v31, 0.0004427343 }
 0x251   : > { %v1012_v20 = vpop.eup %1011 }
 0x252   : > { %v1014_v24 = vpop.eup %1013  ;;  %v680_v12 = vmul.f32 0.6931472, %v1012_v20 }
 0x253   : > { %v1016_v27 = vpop.eup %1015  ;;  %v689_v30 = vmul.f32 0.6931472, %v1014_v24 }
 0x254   : > { %v686_v32 = vsel %vm1342_vm2, %v683_v25, %v680_v12  ;;  %v698_v33 = vmul.f32 0.6931472, %v1016_v27  ;;  %v1018_v36 = vpop.eup %1017 }
 0x255   : > { %v695_v38 = vsel %vm694_vm6, %v692_v35, %v689_v30  ;;  %v707_v39 = vmul.f32 0.6931472, %v1018_v36  ;;  %v714_v28 = vsel %vm666_vm3, %v658_v56, %v686_v32  ;;  %v728_v56 = vrot.slane %v723_v48, %v727_v54 }
 0x256   : > { %v704_v37 = vsel %vm703_vm5, %v701_v34, %v698_v33  ;;  %v715_v44 = vsel %vm667_vm8, %v1339_v59, %v695_v38 }
 0x257   : > { %v716_v41 = vsel %vm668_vm4, %v662_v62, %v704_v37  ;;  %v713_v43 = vsel %vm712_vm7, %v710_v40, %v707_v39 }
 0x258   : > { %v718_v42 = vpack.c.bf16 %v716_v41, %v714_v28  ;;  %v717_v45 = vsel %vm669_vm9, %v664_v1, %v713_v43 }
 0x259   : > { %v719_v49 = vpack.c.bf16 %v717_v45, %v715_v44 }
 0x25b   : > { %733 = vmatprep.subr.bf16.mxu1 %v719_v49 }
 0x25c   : > { %734 = vmatpush1.bf16.msra.mxu1 %v718_v42 }
 0x25f   : > { %888 = vmatmul.mubr.msk.bf16.vlgmr.msra.gmra.mrb[4].mxu1 %vm729_vm10, %v362_v47 }
 0x332   : > { %v767_v57 = vpop.f32.mrb[4].mxu1 }
 0x333   : > { %v768_v58 = vadd.f32 %v767_v57, %v728_v56  ;;  %v769_v59 = vpop.f32.mrb[5].mxu1 }
 0x334   : > { %v770_v60 = vadd.f32 %v769_v59, %v728_v56  ;;  %v771_v62 = vpop.f32.mrb[6].mxu1 }
 0x335   : > { %v772_v63 = vpop.f32.mrb[7].mxu1 }
 0x336   : > { %v776_v0 = vcombine.low %v768_v58, %v770_v60  ;;  %804 = sbr.rel (!%p1167_p5) target bundleno = 856 (0x358), region = 52 }
 0x338   : > { %v783_v1 = vrot.slane %v776_v0, %v782_v61 }
 0x33a   : > { %v790_v14 = vrot.slane %v783_v1, %v782_v61 }
 0x33c   : > { %796 = vst.msk [vmem:[%s286_s22] sm:$0x3] %vm794_vm11, %v790_v14 }
 0x33d   : > { %s1425_s30 = smov (!%p807_p11, %s806_s30), 2 }
 0x33e   : > { %s1359_s9 = sshll.u32 %s1425_s30, 4 }
 0x33f   : > { %s811_s10 = ssub.s32 32, %s1359_s9 }
 0x340   : > { %812 = vsyncadd %s1354_s24, %s811_s10  ;;  %p892_p12 = scmp.ne.s32.totalorder %s1359_s9, 0  ;;  %s1368_s12 = scalar_lea.hbm %s1415_s7, %s1187_s20 }
 0x341   : > { %s817_s23 = sshll.u32 %s286_s22, 4  ;;  %s1085_s16 = smov [#allocation3]   ;;  %s818_s23 = int_to_ptr.vmem [resolvable:$true] %s817_s23 }
 0x342   : > { %s1019_s6 = scalar_lea.vmem %s818_s23, %s1359_s9  ;;  %s1023_s17 = sshll.u32 %s1085_s16, 4  ;;  %s1024_s17 = int_to_ptr.vmem [resolvable:$false] %s1023_s17 }
 0x343   : > { %p1020_p13 = scmp.ne.s32.totalorder %s818_s23, %s1019_s6  ;;  %s1025_s18 = scalar_lea.vmem %s1024_s17, 64 }
 0x344   : > { %p1026_p2 = scmp.lt.s32.totalorder %s818_s23, %s1024_s17  ;;  %p1027_p3 = scmp.lt.s32.totalorder %s1025_s18, %s1019_s6 }
 0x345   : > { %p1021_p0 = pnand %p1020_p13, %p892_p12 }
 0x346   : > { %p1028_p4 = por %p1027_p3, %p1026_p2 }
 0x347   : > { %p1022_p1 = pneg %p1021_p0 }
 0x349   : > { %p1029_p5 = pnand %p1028_p4, %p1022_p1 }
 0x34b   : > { %1032 = shalt.err (!%p1029_p5)
}
 0x34c   : > { %s1033_s20 = scalar_lea.hbm %s1368_s12, %s1359_s9  ;;  %s1037_s22 = scalar_lea.hbm %s1415_s7, 48 }
 0x34d   : > { %p1034_p7 = scmp.ne.s32.totalorder %s1368_s12, %s1033_s20  ;;  %p1038_p10 = scmp.lt.u32.totalorder %s1368_s12, %s1415_s7 }
 0x34e   : > { %p1039_p11 = scmp.lt.u32.totalorder %s1037_s22, %s1033_s20  ;;  %p1041_p0 = scmp.lt.u32.totalorder %s1033_s20, %s1368_s12 }
 0x34f   : > { %p1035_p8 = pnand %p1034_p7, %p892_p12 }
 0x350   : > { %p1040_p13 = por %p1039_p11, %p1038_p10 }
 0x351   : > { %p1036_p9 = pneg %p1035_p8 }
 0x352   : > { %p1042_p1 = por %p1041_p0, %p1040_p13 }
 0x354   : > { %p1043_p2 = pnand %p1042_p1, %p1036_p9 }
 0x356   : > { %1046 = shalt.err (!%p1043_p2)
}
 0x357   : > { %820 = dma.vmem_to_hbm [thread:$0]  (%p892_p12), %s818_s23, %s1359_s9, %s1368_s12, %s1354_s24  }
 0x358 PF: > { %p934_p3 = scmp.ge.s32.totalorder %s1081_s29, 2  ;;  %s829_s10 = sand.u32 1, %s1069_s26  }
 0x359   : > { %s830_s14 = scalar_lea.sflag [#allocation4], %s829_s10 }
 0x35a   : > { %p931_p4 = pnand %p934_p3, %p1171_p6 }
 0x35c   : > { %1064 = dma.done.wait (!%p931_p4), %s830_s14, 32  }
 0x35d   : > { %1066 = vsyncadd (!%p931_p4), %s830_s14, 4294967264  ;;  %p19_p5 = scmp.ge.s32.totalorder %s1154_s8, 4   ;;  %s1420_s26 = smov %s1073_s27 }
 0x35e   : > { %s1421_s27 = smov %s1077_s28  ;;  %s1422_s28 = smov %s1165_s11 }
 0x35f   : > { %s1423_s29 = smov %s1154_s8  ;;  %21 = sbr.rel (!%p19_p5) target bundleno = 6 (0x6), region = 83 }
 0x366   :  { %835 = vsyncpa [#allocation4], 1 }
 0x367   :  { %837 = vsyncpa [#allocation4 + $0x1], 1 }

</bundles_post_ra>
